<compile_context>
chip_gen: v6e
topology: v6e:2x2x1
jax: 0.10.0
libtpu: 0.0.40
codegen_flags: <defaults>
</compile_context>

<pallas_src>
import jax
import jax.numpy as jnp
from jax.experimental import pallas as pl
from jax.experimental.pallas import tpu as pltpu

LANES = 128
BLOCK_ROWS = 2048          # rows per grid step (2048*128*4B = 1 MiB per f32 input buffer)
MAX_SHARDS = 2             # v7x has 2 TensorCores; extra shard is a cheap serial loop elsewhere
_EPS = 1e-7                # smoothing eps used inside dice and inside log2 (matches the module)
_NEG_FILL = -1e30          # pad value for logits: sigmoid(-1e30) == 0 exactly


def _round_up(a, b):
    return ((a + b - 1) // b) * b


def _ce_dice_partial_kernel(x_ref, t_ref, out_ref, acc_ref):
    """Accumulate sum(p*t), sum(p), sum(t) as (8,128) bands; dump partials at the last step."""
    s = pl.program_id(1)

    @pl.when(s == 0)
    def _():
        acc_ref[...] = jnp.zeros_like(acc_ref)

    x = x_ref[...].astype(jnp.float32)
    t = t_ref[...].astype(jnp.float32)
    p = jax.nn.sigmoid(x)                       # with_logits=True -> sigmoid (EUP)

    br = x.shape[0]
    # Tile-preserving reshape (br,128)->(br//8,8,128): major-axis sum is pure full-vreg adds.
    pt = jnp.sum((p * t).reshape(br // 8, 8, LANES), axis=0)
    ps = jnp.sum(p.reshape(br // 8, 8, LANES), axis=0)
    ts = jnp.sum(t.reshape(br // 8, 8, LANES), axis=0)

    # 8-sublane-aligned bands of the (24,128) accumulator -> full-vreg loads/stores.
    acc_ref[0:8, :] += pt
    acc_ref[8:16, :] += ps
    acc_ref[16:24, :] += ts

    @pl.when(s == pl.num_programs(1) - 1)
    def _():
        out_ref[0, :, :] = acc_ref[...]


def _choose_layout(total):
    rows = pl.cdiv(total, LANES)
    block_rows = BLOCK_ROWS if rows >= BLOCK_ROWS else _round_up(rows, 8)
    steps_total = pl.cdiv(rows, block_rows)
    num_shards = MAX_SHARDS if steps_total >= MAX_SHARDS else 1
    # Don't introduce a pad copy purely because of the shard split.
    if (num_shards > 1 and rows == steps_total * block_rows
            and steps_total % num_shards != 0):
        num_shards = 1
    steps = pl.cdiv(steps_total, num_shards)
    rows_padded = num_shards * steps * block_rows
    return block_rows, num_shards, steps, rows_padded


def ce_dice_loss(x, target):
    """x, target: arrays of identical shape (e.g. NCHW). Returns scalar f32 loss."""
    assert x.shape == target.shape
    total = int(x.size)

    block_rows, num_shards, steps, rows_padded = _choose_layout(total)
    padded_total = rows_padded * LANES

    # Stream native dtypes; cast to f32 inside the kernel. Pad only if actually needed.
    xf = x.reshape(-1)
    tf = target.reshape(-1)
    pad = padded_total - total
    if pad:
        xf = jnp.pad(xf, (0, pad), constant_values=_NEG_FILL)   # sigmoid(pad) == 0
        tf = jnp.pad(tf, (0, pad))                               # target pad == 0
    X = xf.reshape(rows_padded, LANES)
    T = tf.reshape(rows_padded, LANES)

    in_spec = pl.BlockSpec((block_rows, LANES), lambda p, s: (p * steps + s, 0))

    partials = pl.pallas_call(
        _ce_dice_partial_kernel,
        out_shape=jax.ShapeDtypeStruct((num_shards, 24, LANES), jnp.float32),
        grid_spec=pltpu.PrefetchScalarGridSpec(
            num_scalar_prefetch=0,
            grid=(num_shards, steps),
            in_specs=[in_spec, in_spec],
            out_specs=pl.BlockSpec((1, 24, LANES), lambda p, s: (p, 0, 0)),
            scratch_shapes=[pltpu.VMEM((24, LANES), jnp.float32)],
        ),
        compiler_params=pltpu.CompilerParams(
            dimension_semantics=("parallel", "arbitrary"),
        ),
    )(X, T)

    # Tiny final combine + scalar math in plain JAX.
    parts = partials.reshape(num_shards, 3, 8, LANES)
    sums = jnp.sum(parts, axis=(0, 2, 3))                       # (3,)
    tp, sp, st = sums[0], sums[1], sums[2]
    n = jnp.float32(total)                                      # valid-element count (static)

    dice_pos = (2.0 * tp + _EPS) / (sp + st + _EPS)
    # sum((1-p)*(1-t)) over valid elements = n - sum(p) - sum(t) + sum(p*t)
    tn = n - sp - st + tp
    dice_neg = (2.0 * tn + _EPS) / ((n - sp) + (n - st) + _EPS)

    return -(jnp.log2(dice_pos + _EPS) + jnp.log2(dice_neg + _EPS))


def _reference(x, target):
    p = jax.nn.sigmoid(x.astype(jnp.float32))
    t = target.astype(jnp.float32)

    def dice(a, b):
        tp = jnp.sum(a * b)
        return (2.0 * tp + _EPS) / (jnp.sum(a) + jnp.sum(b) + _EPS)

    return -(jnp.log2(dice(p, t) + _EPS) + jnp.log2(dice(1.0 - p, 1.0 - t) + _EPS))


if __name__ == "__main__":
    key = jax.random.PRNGKey(0)
    k1, k2 = jax.random.split(key)

    # Primary small NCHW example (matches the PyTorch module's expected layout).
    x = jax.random.normal(k1, (2, 4, 16, 16), dtype=jnp.float32)            # logits
    target = (jax.random.uniform(k2, (2, 4, 16, 16)) > 0.5).astype(jnp.float32)

    loss = ce_dice_loss(x, target)
    jax.block_until_ready(loss)
    ref = _reference(x, target)
    assert jnp.allclose(loss, ref, rtol=1e-4, atol=1e-4), (loss, ref)

    # Ragged size -> exercises the (minimal) padding path.
    xr = jax.random.normal(k1, (2, 3, 50, 50), dtype=jnp.float32)
    tr = (jax.random.uniform(k2, (2, 3, 50, 50)) > 0.5).astype(jnp.float32)
    lr = ce_dice_loss(xr, tr)
    assert jnp.allclose(lr, _reference(xr, tr), rtol=1e-4, atol=1e-4), (lr, _reference(xr, tr))

    # Larger size -> exercises the 2-shard ("parallel") path with no padding.
    xb = jax.random.normal(k1, (2, 4, 256, 256), dtype=jnp.float32)
    tb = (jax.random.uniform(k2, (2, 4, 256, 256)) > 0.5).astype(jnp.float32)
    lb = ce_dice_loss(xb, tb)
    assert jnp.allclose(lb, _reference(xb, tb), rtol=1e-4, atol=1e-4), (lb, _reference(xb, tb))

    print("KERNEL_OK")
</pallas_src>

<mosaic_0001>
module attributes {stable_mosaic.version = 11 : i64} {
  func.func @_ce_dice_partial_kernel(%arg0: i32, %arg1: i32, %arg2: memref<16x128xf32, #tpu.memory_space<vmem>>, %arg3: memref<16x128xf32, #tpu.memory_space<vmem>>, %arg4: memref<1x24x128xf32, #tpu.memory_space<vmem>>, %arg5: memref<24x128xf32, #tpu.memory_space<vmem>>) attributes {dimension_semantics = [#tpu.dimension_semantics<parallel>, #tpu.dimension_semantics<arbitrary>], iteration_bounds = array<i64: 1, 1>, scalar_prefetch = 0 : i64, scratch_operands = 1 : i64, tpu.core_type = #tpu.core_type<tc>, window_params = [{transform_indices = @transform_0, window_bounds = array<i64: 16, 128>}, {transform_indices = @transform_1, window_bounds = array<i64: 16, 128>}, {transform_indices = @transform_2, window_bounds = array<i64: 1, 24, 128>}]} {
    %c0_i32 = arith.constant 0 : i32
    %0 = arith.cmpi eq, %arg1, %c0_i32 : i32
    %1 = arith.extui %0 : i1 to i32
    %c0_i32_0 = arith.constant 0 : i32
    %2 = arith.cmpi ne, %1, %c0_i32_0 : i32
    scf.if %2 {
      %cst_19 = arith.constant 0.000000e+00 : f32
      %29 = vector.broadcast %cst_19 : f32 to vector<24x128xf32>
      %c0_20 = arith.constant 0 : index
      %c0_21 = arith.constant 0 : index
      %30 = vector.load %arg5[%c0_20, %c0_21] : memref<24x128xf32, #tpu.memory_space<vmem>>, vector<24x128xf32>
      tpu.vector_store %arg5[%c0_20, %c0_21], %29 {strides = array<i32>} : memref<24x128xf32, #tpu.memory_space<vmem>>, vector<24x128xf32>,
    } else {
    }
    %c0 = arith.constant 0 : index
    %c0_1 = arith.constant 0 : index
    %3 = vector.load %arg2[%c0, %c0_1] : memref<16x128xf32, #tpu.memory_space<vmem>>, vector<16x128xf32>
    %c0_2 = arith.constant 0 : index
    %c0_3 = arith.constant 0 : index
    %4 = vector.load %arg3[%c0_2, %c0_3] : memref<16x128xf32, #tpu.memory_space<vmem>>, vector<16x128xf32>
    %5 = arith.negf %3 : vector<16x128xf32>
    %6 = math.exp %5 : vector<16x128xf32>
    %cst = arith.constant 1.000000e+00 : f32
    %7 = vector.broadcast %cst : f32 to vector<16x128xf32>
    %8 = arith.addf %7, %6 : vector<16x128xf32>
    %9 = arith.divf %7, %8 : vector<16x128xf32>
    %10 = arith.mulf %9, %4 : vector<16x128xf32>
    %11 = vector.shape_cast %10 : vector<16x128xf32> to vector<2x8x128xf32>
    %cst_4 = arith.constant dense<0.000000e+00> : vector<8x128xf32>
    %12 = vector.multi_reduction <add>, %11, %cst_4 [0] : vector<2x8x128xf32> to vector<8x128xf32>
    %13 = vector.shape_cast %9 : vector<16x128xf32> to vector<2x8x128xf32>
    %cst_5 = arith.constant dense<0.000000e+00> : vector<8x128xf32>
    %14 = vector.multi_reduction <add>, %13, %cst_5 [0] : vector<2x8x128xf32> to vector<8x128xf32>
    %15 = vector.shape_cast %4 : vector<16x128xf32> to vector<2x8x128xf32>
    %cst_6 = arith.constant dense<0.000000e+00> : vector<8x128xf32>
    %16 = vector.multi_reduction <add>, %15, %cst_6 [0] : vector<2x8x128xf32> to vector<8x128xf32>
    %c0_7 = arith.constant 0 : index
    %c0_8 = arith.constant 0 : index
    %17 = vector.load %arg5[%c0_7, %c0_8] : memref<24x128xf32, #tpu.memory_space<vmem>>, vector<8x128xf32>
    %18 = arith.addf %17, %12 : vector<8x128xf32>
    %c0_9 = arith.constant 0 : index
    %c0_10 = arith.constant 0 : index
    %19 = vector.load %arg5[%c0_9, %c0_10] : memref<24x128xf32, #tpu.memory_space<vmem>>, vector<8x128xf32>
    tpu.vector_store %arg5[%c0_9, %c0_10], %18 {strides = array<i32>} : memref<24x128xf32, #tpu.memory_space<vmem>>, vector<8x128xf32>,
    %c8 = arith.constant 8 : index
    %c0_11 = arith.constant 0 : index
    %20 = vector.load %arg5[%c8, %c0_11] : memref<24x128xf32, #tpu.memory_space<vmem>>, vector<8x128xf32>
    %21 = arith.addf %20, %14 : vector<8x128xf32>
    %c8_12 = arith.constant 8 : index
    %c0_13 = arith.constant 0 : index
    %22 = vector.load %arg5[%c8_12, %c0_13] : memref<24x128xf32, #tpu.memory_space<vmem>>, vector<8x128xf32>
    tpu.vector_store %arg5[%c8_12, %c0_13], %21 {strides = array<i32>} : memref<24x128xf32, #tpu.memory_space<vmem>>, vector<8x128xf32>,
    %c16 = arith.constant 16 : index
    %c0_14 = arith.constant 0 : index
    %23 = vector.load %arg5[%c16, %c0_14] : memref<24x128xf32, #tpu.memory_space<vmem>>, vector<8x128xf32>
    %24 = arith.addf %23, %16 : vector<8x128xf32>
    %c16_15 = arith.constant 16 : index
    %c0_16 = arith.constant 0 : index
    %25 = vector.load %arg5[%c16_15, %c0_16] : memref<24x128xf32, #tpu.memory_space<vmem>>, vector<8x128xf32>
    tpu.vector_store %arg5[%c16_15, %c0_16], %24 {strides = array<i32>} : memref<24x128xf32, #tpu.memory_space<vmem>>, vector<8x128xf32>,
    %c0_i32_17 = arith.constant 0 : i32
    %26 = arith.cmpi eq, %arg1, %c0_i32_17 : i32
    %27 = arith.extui %26 : i1 to i32
    %c0_i32_18 = arith.constant 0 : i32
    %28 = arith.cmpi ne, %27, %c0_i32_18 : i32
    scf.if %28 {
      %c0_19 = arith.constant 0 : index
      %c0_20 = arith.constant 0 : index
      %29 = vector.load %arg5[%c0_19, %c0_20] : memref<24x128xf32, #tpu.memory_space<vmem>>, vector<24x128xf32>
      %c0_21 = arith.constant 0 : index
      %c0_22 = arith.constant 0 : index
      %c0_23 = arith.constant 0 : index
      %30 = vector.load %arg4[%c0_21, %c0_22, %c0_23] : memref<1x24x128xf32, #tpu.memory_space<vmem>>, vector<1x24x128xf32>
      %31 = vector.shape_cast %30 : vector<1x24x128xf32> to vector<24x128xf32>
      %32 = vector.shape_cast %29 : vector<24x128xf32> to vector<1x24x128xf32>
      tpu.vector_store %arg4[%c0_21, %c0_22, %c0_23], %32 {strides = array<i32>} : memref<1x24x128xf32, #tpu.memory_space<vmem>>, vector<1x24x128xf32>,
    } else {
    }
    return
  }
  func.func @transform_0(%arg0: i32, %arg1: i32) -> (i32, i32) {
    %c1_i32 = arith.constant 1 : i32
    %0 = arith.muli %arg0, %c1_i32 : i32
    %1 = arith.addi %0, %arg1 : i32
    %c0_i32 = arith.constant 0 : i32
    %c0_i32_0 = arith.constant 0 : i32
    return %1, %c0_i32 : i32, i32
  }
  func.func @transform_1(%arg0: i32, %arg1: i32) -> (i32, i32) {
    %c1_i32 = arith.constant 1 : i32
    %0 = arith.muli %arg0, %c1_i32 : i32
    %1 = arith.addi %0, %arg1 : i32
    %c0_i32 = arith.constant 0 : i32
    %c0_i32_0 = arith.constant 0 : i32
    return %1, %c0_i32 : i32, i32
  }
  func.func @transform_2(%arg0: i32, %arg1: i32) -> (i32, i32, i32) {
    %c0_i32 = arith.constant 0 : i32
    %c0_i32_0 = arith.constant 0 : i32
    %c0_i32_1 = arith.constant 0 : i32
    return %arg0, %c0_i32, %c0_i32_0 : i32, i32, i32
  }
}

</mosaic_0001>

<bundles_post_ra>
// kernel: tpu_custom_call.1
= control target key start
LH: loop header
LB: loop body
LE: loop exit
PB: predicated region body
PF: predicated region fallthrough
CT: control target
= control target key end

     0   :  { %7 = vsyncpa [#allocation4], 0  ;;  %s235_s0 = inlined_call_operand.hbm [shape: f32[16,128], index: 0, kind: input, shape index: {}]   ;;  %s236_s1 = inlined_call_operand.hbm [shape: f32[16,128], index: 1, kind: input, shape index: {}]   ;;  %s237_s2 = inlined_call_operand.hbm [shape: f32[1,24,128], index: 2, kind: output, shape index: {}]  }
   0x1   :  { %8 = vsyncpa [#allocation7], 0 }
   0x2   :  { %9 = vsyncpa [#allocation5], 0  ;;  %s197_s9 = smov [#allocation3]  }
   0x3   :  { %s19_s10 = sshll.u32 %s197_s9, 4  ;;  %s20_s10 = int_to_ptr.vmem [resolvable:$true] %s19_s10 }
   0x4   :  { %s139_s11 = scalar_lea.vmem %s20_s10, 256  ;;  %p144_p1 = scmp.lt.s32.totalorder %s20_s10, %s20_s10 }
   0x5   :  { %p140_p0 = scmp.ne.s32.totalorder %s20_s10, %s139_s11  ;;  %p145_p2 = scmp.lt.s32.totalorder %s139_s11, %s139_s11 }
   0x7   :  { %p146_p3 = por %p145_p2, %p144_p1 }
   0x9   :  { %p147_p4 = pnand %p146_p3, %p140_p0 }
   0xb   :  { %150 = shalt.err (!%p147_p4)
}
   0xc   :  { %s198_s12 = smov 128   ;;  %s199_s13 = smov 8  }
   0xd   :  { %25 = dma.hbm_to_vmem [thread:$0]  %s235_s0, 256, %s20_s10, [#allocation4], %s198_s12, %s198_s12, %s199_s13  }
   0xe   :  { %s200_s16 = smov [#allocation6]  }
   0xf   :  { %s35_s17 = sshll.u32 %s200_s16, 4  ;;  %s36_s17 = int_to_ptr.vmem [resolvable:$true] %s35_s17 }
  0x10   :  { %s159_s18 = scalar_lea.vmem %s36_s17, 256  ;;  %p164_p6 = scmp.lt.s32.totalorder %s36_s17, %s36_s17 }
  0x11   :  { %p160_p5 = scmp.ne.s32.totalorder %s36_s17, %s159_s18  ;;  %p165_p7 = scmp.lt.s32.totalorder %s159_s18, %s159_s18 }
  0x13   :  { %p166_p8 = por %p165_p7, %p164_p6 }
  0x15   :  { %p167_p9 = pnand %p166_p8, %p160_p5 }
  0x17   :  { %170 = shalt.err (!%p167_p9)
}
  0x18   :  { %41 = dma.hbm_to_vmem [thread:$0]  %s236_s1, 256, %s36_s17, [#allocation7], %s198_s12, %s198_s12, %s199_s13  }
  0x19   :  { %191 = dma.done.wait [#allocation4], 256  }
  0x1a   :  { %192 = vsyncadd [#allocation4], 4294967040 }
  0x1b   :  { %193 = dma.done.wait [#allocation7], 256  }
  0x1c   :  { %194 = vsyncadd [#allocation7], 4294967040  ;;  %v59_v0 = vld [vmem:[#allocation3] sm:$0xff]  ;;  %v60_v1 = vld [vmem:[#allocation3 + $0x8] sm:$0xff]  ;;  %s201_s0 = smov [#allocation8]  }
  0x1d   :  { %v61_v2 = vld [vmem:[#allocation6] sm:$0xff]  ;;  %v62_v3 = vld [vmem:[#allocation6 + $0x8] sm:$0xff]  ;;  %v116_v4 = vmul.f32 -1.442695, %v59_v0  ;;  %v117_v5 = vmul.f32 -1.442695, %v60_v1 }
  0x1e   :  { %v79_v6 = vadd.f32 %v62_v3, %v61_v2  ;;  %s103_s1 = sshll.u32 %s201_s0, 4  ;;  %s104_s1 = int_to_ptr.vmem [resolvable:$true] %s103_s1 }
  0x1f   :  { %123 = vpow2.f32 %v116_v4  ;;  %s171_s21 = scalar_lea.vmem %s104_s1, 384  ;;  %p176_p11 = scmp.lt.s32.totalorder %s104_s1, %s104_s1 }
  0x20   :  { %125 = vpow2.f32 %v117_v5  ;;  %97 = vst [vmem:[#allocation8 + $0x10] sm:$0xff] %v79_v6  ;;  %p172_p10 = scmp.ne.s32.totalorder %s104_s1, %s171_s21  ;;  %p177_p12 = scmp.lt.s32.totalorder %s171_s21, %s171_s21 }
  0x22   :  { %p178_p13 = por %p177_p12, %p176_p11 }
  0x24   :  { %p179_p0 = pnand %p178_p13, %p172_p10 }
  0x2c   :  { %v124_v7 = vpop.eup %123 }
  0x2d   :  { %v126_v8 = vpop.eup %125  ;;  %v69_v9 = vadd.f32 1.0, %v124_v7 }
  0x2e   :  { %v70_v10 = vadd.f32 1.0, %v126_v8 }
  0x2f   :  { %127 = vrcp.f32 %v69_v9 }
  0x30   :  { %129 = vrcp.f32 %v70_v10 }
  0x3c   :  { %v128_v11 = vpop.eup %127 }
  0x3d   :  { %v130_v12 = vpop.eup %129  ;;  %v75_v13 = vmul.f32 %v128_v11, %v61_v2 }
  0x3e   :  { %v76_v14 = vmul.f32 %v130_v12, %v62_v3  ;;  %v78_v15 = vadd.f32 %v130_v12, %v128_v11 }
  0x40   :  { %v77_v16 = vadd.f32 %v76_v14, %v75_v13  ;;  %96 = vst [vmem:[#allocation8 + $0x8] sm:$0xff] %v78_v15 }
  0x42   :  { %95 = vst [vmem:[#allocation8] sm:$0xff] %v77_v16 }
  0x43   :  { %182 = shalt.err (!%p179_p0)
}
  0x44   :  { %109 = dma.vmem_to_hbm [thread:$0]  %s104_s1, 384, %s237_s2, [#allocation5], %s198_s12, %s198_s12, %s199_s13  }
  0x45   :  { %195 = dma.done.wait [#allocation5], 384  }
  0x46   :  { %196 = vsyncadd [#allocation5], 4294966912 }
  0x47   :  { %113 = vsyncpa [#allocation4], 1 }
  0x48   :  { %114 = vsyncpa [#allocation7], 1 }
  0x49   :  { %115 = vsyncpa [#allocation5], 1 }

</bundles_post_ra>
